<compile_context>
chip_gen: v6e
topology: v6e:2x2x1
jax: 0.10.0
libtpu: 0.0.40
codegen_flags: <defaults>
</compile_context>

<pallas_src>
import functools
import math

import jax
import jax.numpy as jnp
from jax.experimental import pallas as pl
from jax.experimental.pallas import tpu as pltpu

LANE = 128
SUBLANE = 8
TILE_BYTES = 2 * 1024 * 1024    # per input per pipeline buffer (DMA block)
CHUNK_BYTES = 256 * 1024        # inner compute chunk (bounds live working set)


# ------------------------------ kernel helpers ------------------------------ #

def _masked(vals, rows, rows_left):
    """Zero rows >= rows_left (rows_left may be <= 0 => everything zeroed)."""
    if rows_left is None:
        return vals
    rid = jax.lax.broadcasted_iota(jnp.int32, (rows, LANE), 0)
    valid = rid < rows_left
    return tuple(jnp.where(valid, v, 0.0) for v in vals)


def _acc(ref, partial, rows):
    """Accumulate a (rows, 128) partial into an (8, 128) accumulator ref."""
    if rows % SUBLANE == 0:
        # vreg-wise adds only (no cross-sublane reduce per step).
        ref[...] += jnp.sum(partial.reshape(rows // SUBLANE, SUBLANE, LANE), axis=0)
    else:
        # tiny single-tile fallback (rows < 8*k): per-lane sums into sublane 0
        ref[pl.ds(0, 1), :] += jnp.sum(partial, axis=0, keepdims=True)


def _run_tile_chunks(add_chunk, *, r, r_tile, chunk, g, need_mask):
    """Run add_chunk over the current tile in `chunk`-row pieces.

    Unmasked fast path for fully-in-bounds tiles; the masked path (ragged last
    tile or over-covered split tile) is gated behind pl.when so it only runs
    where needed.
    """
    n_chunks = r_tile // chunk
    tail_rows = r_tile - n_chunks * chunk

    def run(masked):
        def do(off, rows):
            rows_left = (r - g * r_tile - off) if masked else None
            add_chunk(off, rows, rows_left)

        if n_chunks == 1:
            do(0, chunk)
        else:
            def body(i, carry):
                off = pl.multiple_of(i * chunk, chunk)
                do(off, chunk)
                return carry
            jax.lax.fori_loop(0, n_chunks, body, 0, unroll=True)
        if tail_rows:
            do(n_chunks * chunk, tail_rows)

    if need_mask:
        full_tiles = r // r_tile          # tiles guaranteed fully in-bounds

        @pl.when(g < full_tiles)
        def _():
            run(False)

        @pl.when(g >= full_tiles)
        def _():
            run(True)
    else:
        run(False)


# --------------------------------- kernels ---------------------------------- #

def _entropy2_kernel(lv_ref, u_ref, su2_ref, slv_ref, *,
                     r, r_tile, nk, chunk, need_mask):
    """Partial sums of u^2*exp(-log_var) and log_var for one (batch, split)."""
    c = pl.program_id(1)
    k = pl.program_id(2)
    g = c * nk + k                        # global row-tile index

    @pl.when(k == 0)
    def _():
        su2_ref[...] = jnp.zeros_like(su2_ref)
        slv_ref[...] = jnp.zeros_like(slv_ref)

    def add_chunk(off, rows, rows_left):
        lv = lv_ref[pl.ds(off, rows), :].astype(jnp.float32)
        u = u_ref[pl.ds(off, rows), :].astype(jnp.float32)
        # mask BEFORE exp so out-of-bounds garbage never reaches the EUP/accs.
        lv, u = _masked((lv, u), rows, rows_left)
        inv_var = jnp.exp(-lv)
        _acc(su2_ref, u * u * inv_var, rows)
        _acc(slv_ref, lv, rows)

    _run_tile_chunks(add_chunk, r=r, r_tile=r_tile, chunk=chunk, g=g,
                     need_mask=need_mask)


def _entropy4_kernel(s_ref, m_ref, lv_ref, u_ref, t1_ref, cr_ref, un2_ref, *,
                     r, r_tile, nk, chunk, need_mask):
    """Partial sums of d^2/var, d*u/var, u^2/var for one (batch, split)."""
    c = pl.program_id(1)
    k = pl.program_id(2)
    g = c * nk + k

    @pl.when(k == 0)
    def _():
        t1_ref[...] = jnp.zeros_like(t1_ref)
        cr_ref[...] = jnp.zeros_like(cr_ref)
        un2_ref[...] = jnp.zeros_like(un2_ref)

    def add_chunk(off, rows, rows_left):
        lv = lv_ref[pl.ds(off, rows), :].astype(jnp.float32)
        u = u_ref[pl.ds(off, rows), :].astype(jnp.float32)
        d = (s_ref[pl.ds(off, rows), :].astype(jnp.float32)
             - m_ref[pl.ds(off, rows), :].astype(jnp.float32))
        lv, u, d = _masked((lv, u, d), rows, rows_left)
        inv_var = jnp.exp(-lv)
        div = d * inv_var                 # reused: saves a VALU mul/elem
        uiv = u * inv_var
        _acc(t1_ref, div * d, rows)       # sum(sample_n^2)
        _acc(cr_ref, div * u, rows)       # sum(sample_n * u_n)
        _acc(un2_ref, uiv * u, rows)      # sum(u_n^2)

    _run_tile_chunks(add_chunk, r=r, r_tile=r_tile, chunk=chunk, g=g,
                     need_mask=need_mask)


# --------------------------------- wrapper ----------------------------------- #

def _prepare(xs):
    """Flatten (N, ...) -> lane-dense (N, r, 128) bulk + optional lane tail."""
    n = xs[0].shape[0]
    f = math.prod(xs[0].shape[1:])
    xfs = [x.reshape(n, f) for x in xs]
    r = f // LANE
    tail = f - r * LANE
    if tail == 0:
        # zero-copy reshape
        return [xf.reshape(n, r, LANE) for xf in xfs], None, r
    if r == 0:
        # feature dim narrower than one lane row: tiny inert zero pad
        # (log_var=0, u/sample/mu=0 contribute exactly 0 to every term).
        bulks = [jnp.pad(xf, ((0, 0), (0, LANE - f))).reshape(n, 1, LANE)
                 for xf in xfs]
        return bulks, None, 1
    bulks = [xf[:, :r * LANE].reshape(n, r, LANE) for xf in xfs]
    tails = [xf[:, r * LANE:] for xf in xfs]
    return bulks, tails, r


def _run(kernel_fn, bulks, n_terms, r_tile_arg):
    n, r, _ = bulks[0].shape
    itemsize = jnp.dtype(bulks[0].dtype).itemsize
    quantum = max(8, 32 // itemsize)                       # min sublane tile
    chunk_default = max(quantum, CHUNK_BYTES // (LANE * itemsize))
    max_rows = max(chunk_default, TILE_BYTES // (LANE * itemsize))

    if r_tile_arg is not None:
        r_tile = r if r_tile_arg >= r else max(quantum,
                                               (r_tile_arg // quantum) * quantum)
    else:
        r_tile = r if r <= max_rows else max_rows
    chunk = min(chunk_default, r_tile)

    kt = pl.cdiv(r, r_tile)                                # total row tiles
    ns = 2 if (n == 1 and kt >= 2) else 1                  # v7x core split
    nk = pl.cdiv(kt, ns)                                   # tiles per split
    need_mask = (ns * nk * r_tile) != r

    kern = functools.partial(kernel_fn, r=r, r_tile=r_tile, nk=nk,
                             chunk=chunk, need_mask=need_mask)

    if ns * nk > kt:
        # over-covered split tiles: clamp block index (data is fully masked).
        def in_map(b, c, k):
            return (b, jnp.minimum(c * nk + k, kt - 1), 0)
    else:
        def in_map(b, c, k):
            return (b, c * nk + k, 0)

    in_spec = pl.BlockSpec((None, r_tile, LANE), in_map)
    out_spec = pl.BlockSpec((None, None, SUBLANE, LANE),
                            lambda b, c, k: (b, c, 0, 0))
    out_shape = tuple(jax.ShapeDtypeStruct((n, ns, SUBLANE, LANE), jnp.float32)
                      for _ in range(n_terms))

    flops_per = 5 if n_terms == 2 else 10
    cost = pl.CostEstimate(
        flops=int(flops_per * n * r * LANE),
        transcendentals=int(n * r * LANE),
        bytes_accessed=int(len(bulks) * n * r * LANE * itemsize))
    vmem_lim = int(min(64 << 20,
                       max(32 << 20,
                           2 * len(bulks) * r_tile * LANE * itemsize + (8 << 20))))

    outs = pl.pallas_call(
        kern,
        out_shape=out_shape,
        grid_spec=pltpu.PrefetchScalarGridSpec(
            num_scalar_prefetch=0,
            grid=(n, ns, nk),                              # reduction axis last
            in_specs=[in_spec] * len(bulks),
            out_specs=tuple(out_spec for _ in range(n_terms)),
        ),
        compiler_params=pltpu.CompilerParams(
            dimension_semantics=("parallel", "parallel", "arbitrary"),
            vmem_limit_bytes=vmem_lim),
        cost_estimate=cost,
    )(*bulks)
    # collapse per-split / per-sublane / per-lane partials -> per-batch scalars
    return tuple(jnp.sum(o, axis=(1, 2, 3)) for o in outs)


def entropy_multivariate_normal(r_tile=None, **kwargs):
    """Pallas-TPU port of EntropyMultivariateNormal.forward (2- and 4-arg)."""
    if set(kwargs) == {'log_var', 'u'}:
        log_var, u = kwargs['log_var'], kwargs['u']
        bulks, tails, _ = _prepare([log_var, u])
        su2, slv = _run(_entropy2_kernel, bulks, 2, r_tile)
        if tails is not None:
            lv_t = tails[0].astype(jnp.float32)
            u_t = tails[1].astype(jnp.float32)
            su2 = su2 + jnp.sum(u_t * u_t * jnp.exp(-lv_t), axis=1)
            slv = slv + jnp.sum(lv_t, axis=1)
        return 0.5 * (jnp.log1p(su2) + slv)

    elif set(kwargs) == {'sample', 'mu', 'log_var', 'u'}:
        sample, mu = kwargs['sample'], kwargs['mu']
        log_var, u = kwargs['log_var'], kwargs['u']
        bulks, tails, _ = _prepare([sample, mu, log_var, u])
        t1, cross, un2 = _run(_entropy4_kernel, bulks, 3, r_tile)
        if tails is not None:
            s_t = tails[0].astype(jnp.float32)
            m_t = tails[1].astype(jnp.float32)
            lv_t = tails[2].astype(jnp.float32)
            u_t = tails[3].astype(jnp.float32)
            iv_t = jnp.exp(-lv_t)
            d_t = s_t - m_t
            t1 = t1 + jnp.sum(d_t * d_t * iv_t, axis=1)
            cross = cross + jnp.sum(d_t * u_t * iv_t, axis=1)
            un2 = un2 + jnp.sum(u_t * u_t * iv_t, axis=1)
        return 0.5 * (t1 - (cross * cross) / (1.0 + un2))

    else:
        raise ValueError("expected kwargs {log_var,u} or {sample,mu,log_var,u}")


# ----------------------------- pure-JAX reference ---------------------------- #

def _ref2(log_var, u):
    ax = tuple(range(1, log_var.ndim))
    sigma = jnp.exp(0.5 * log_var)
    return 0.5 * (jnp.log1p(jnp.sum((u / sigma) ** 2, axis=ax))
                  + jnp.sum(log_var, axis=ax))


def _ref4(sample, mu, log_var, u):
    ax = tuple(range(1, sample.ndim))
    sigma = jnp.exp(0.5 * log_var)
    sn = (sample - mu) / sigma
    un = u / sigma
    t1 = jnp.sum(sn ** 2, axis=ax)
    t2 = jnp.sum(sn * un, axis=ax) ** 2 / (1.0 + jnp.sum(un ** 2, axis=ax))
    return 0.5 * (t1 - t2)


# ---------------------------------- main ------------------------------------ #

def _make(shape, keys, dtype=jnp.float32):
    k1, k2, k3, k4 = keys
    return (0.1 * jax.random.normal(k1, shape, dtype=dtype),   # log_var
            jax.random.normal(k2, shape, dtype=dtype),          # u
            jax.random.normal(k3, shape, dtype=dtype),          # sample
            jax.random.normal(k4, shape, dtype=dtype))          # mu


if __name__ == "__main__":
    keys = jax.random.split(jax.random.PRNGKey(0), 4)

    # 1) Aligned fast path: feature size 4*4*8*8 = 1024 = 8*128 (zero-copy).
    shape = (2, 4, 4, 8, 8)
    log_var, u, sample, mu = _make(shape, keys)
    out2 = jax.block_until_ready(entropy_multivariate_normal(log_var=log_var, u=u))
    assert out2.shape == (shape[0],)
    assert jnp.allclose(out2, _ref2(log_var, u), rtol=1e-5, atol=1e-5)
    out4 = jax.block_until_ready(
        entropy_multivariate_normal(sample=sample, mu=mu, log_var=log_var, u=u))
    assert out4.shape == (shape[0],)
    assert jnp.allclose(out4, _ref4(sample, mu, log_var, u), rtol=1e-5, atol=1e-5)

    # 2) Multi-tile + ragged last row-tile (mask only on last tile):
    #    feature size 4*5*8*16 = 2560 -> r = 20 rows; forced r_tile = 8.
    shape2 = (2, 4, 5, 8, 16)
    log_var2, u2, sample2, mu2 = _make(shape2, keys)
    out2b = jax.block_until_ready(
        entropy_multivariate_normal(log_var=log_var2, u=u2, r_tile=8))
    assert jnp.allclose(out2b, _ref2(log_var2, u2), rtol=1e-5, atol=1e-5)
    out4b = jax.block_until_ready(
        entropy_multivariate_normal(sample=sample2, mu=mu2, log_var=log_var2,
                                    u=u2, r_tile=8))
    assert jnp.allclose(out4b, _ref4(sample2, mu2, log_var2, u2),
                        rtol=1e-5, atol=1e-5)

    # 3) N == 1 core-split path with over-coverage (kt=3 split across 2):
    shape3 = (1, 4, 5, 8, 16)
    log_var3, u3, _, _ = _make(shape3, keys)
    out2c = jax.block_until_ready(
        entropy_multivariate_normal(log_var=log_var3, u=u3, r_tile=8))
    assert jnp.allclose(out2c, _ref2(log_var3, u3), rtol=1e-5, atol=1e-5)

    # 4) Unaligned lane tail: feature size 3*5*7*8 = 840 -> 6 rows + 72 tail.
    shape4 = (2, 3, 5, 7, 8)
    log_var4, u4, sample4, mu4 = _make(shape4, keys)
    out2d = jax.block_until_ready(
        entropy_multivariate_normal(log_var=log_var4, u=u4))
    assert jnp.allclose(out2d, _ref2(log_var4, u4), rtol=1e-5, atol=1e-5)
    out4d = jax.block_until_ready(
        entropy_multivariate_normal(sample=sample4, mu=mu4, log_var=log_var4,
                                    u=u4))
    assert jnp.allclose(out4d, _ref4(sample4, mu4, log_var4, u4),
                        rtol=1e-5, atol=1e-5)

    # 5) Chunked inner fori_loop path: feature size 8*16*32*32 = 131072
    #    -> 1024 rows = 2 x 512-row chunks in a single tile.
    shape5 = (2, 8, 16, 32, 32)
    log_var5, u5, _, _ = _make(shape5, keys)
    out2e = jax.block_until_ready(
        entropy_multivariate_normal(log_var=log_var5, u=u5))
    assert jnp.allclose(out2e, _ref2(log_var5, u5), rtol=1e-4, atol=1e-3)

    print("KERNEL_OK")
</pallas_src>

<mosaic_0001>
module attributes {stable_mosaic.version = 11 : i64} {
  func.func @_entropy2_kernel(%arg0: i32, %arg1: i32, %arg2: i32, %arg3: memref<1x8x128xf32, #tpu.memory_space<vmem>>, %arg4: memref<1x8x128xf32, #tpu.memory_space<vmem>>, %arg5: memref<1x1x8x128xf32, #tpu.memory_space<vmem>>, %arg6: memref<1x1x8x128xf32, #tpu.memory_space<vmem>>) attributes {dimension_semantics = [#tpu.dimension_semantics<parallel>, #tpu.dimension_semantics<parallel>, #tpu.dimension_semantics<arbitrary>], iteration_bounds = array<i64: 2, 1, 1>, scalar_prefetch = 0 : i64, scratch_operands = 0 : i64, tpu.core_type = #tpu.core_type<tc>, window_params = [{transform_indices = @transform_0, window_bounds = array<i64: 1, 8, 128>}, {transform_indices = @transform_1, window_bounds = array<i64: 1, 8, 128>}, {transform_indices = @transform_2, window_bounds = array<i64: 1, 1, 8, 128>}, {transform_indices = @transform_3, window_bounds = array<i64: 1, 1, 8, 128>}]} {
    %c0_i32 = arith.constant 0 : i32
    %0 = arith.cmpi eq, %arg2, %c0_i32 : i32
    %1 = arith.extui %0 : i1 to i32
    %c0_i32_0 = arith.constant 0 : i32
    %2 = arith.cmpi ne, %1, %c0_i32_0 : i32
    scf.if %2 {
      %cst_24 = arith.constant 0.000000e+00 : f32
      %28 = vector.broadcast %cst_24 : f32 to vector<8x128xf32>
      %c0_25 = arith.constant 0 : index
      %c0_26 = arith.constant 0 : index
      %c0_27 = arith.constant 0 : index
      %c0_28 = arith.constant 0 : index
      %29 = vector.load %arg5[%c0_25, %c0_26, %c0_27, %c0_28] : memref<1x1x8x128xf32, #tpu.memory_space<vmem>>, vector<1x1x8x128xf32>
      %30 = vector.shape_cast %29 : vector<1x1x8x128xf32> to vector<8x128xf32>
      %31 = vector.shape_cast %28 : vector<8x128xf32> to vector<1x1x8x128xf32>
      tpu.vector_store %arg5[%c0_25, %c0_26, %c0_27, %c0_28], %31 {strides = array<i32>} : memref<1x1x8x128xf32, #tpu.memory_space<vmem>>, vector<1x1x8x128xf32>,
      %cst_29 = arith.constant 0.000000e+00 : f32
      %32 = vector.broadcast %cst_29 : f32 to vector<8x128xf32>
      %c0_30 = arith.constant 0 : index
      %c0_31 = arith.constant 0 : index
      %c0_32 = arith.constant 0 : index
      %c0_33 = arith.constant 0 : index
      %33 = vector.load %arg6[%c0_30, %c0_31, %c0_32, %c0_33] : memref<1x1x8x128xf32, #tpu.memory_space<vmem>>, vector<1x1x8x128xf32>
      %34 = vector.shape_cast %33 : vector<1x1x8x128xf32> to vector<8x128xf32>
      %35 = vector.shape_cast %32 : vector<8x128xf32> to vector<1x1x8x128xf32>
      tpu.vector_store %arg6[%c0_30, %c0_31, %c0_32, %c0_33], %35 {strides = array<i32>} : memref<1x1x8x128xf32, #tpu.memory_space<vmem>>, vector<1x1x8x128xf32>,
    } else {
    }
    %c0 = arith.constant 0 : index
    %c0_1 = arith.constant 0 : index
    %c0_2 = arith.constant 0 : index
    %3 = vector.load %arg3[%c0, %c0_1, %c0_2] : memref<1x8x128xf32, #tpu.memory_space<vmem>>, vector<1x8x128xf32>
    %4 = vector.shape_cast %3 : vector<1x8x128xf32> to vector<8x128xf32>
    %c0_3 = arith.constant 0 : index
    %c0_4 = arith.constant 0 : index
    %c0_5 = arith.constant 0 : index
    %5 = vector.load %arg4[%c0_3, %c0_4, %c0_5] : memref<1x8x128xf32, #tpu.memory_space<vmem>>, vector<1x8x128xf32>
    %6 = vector.shape_cast %5 : vector<1x8x128xf32> to vector<8x128xf32>
    %cst = arith.constant 0.000000e+00 : f32
    %7 = vector.broadcast %cst : f32 to vector<8x128xf32>
    %8 = arith.subf %7, %4 : vector<8x128xf32>
    %9 = math.exp %8 : vector<8x128xf32>
    %10 = arith.mulf %6, %6 : vector<8x128xf32>
    %11 = arith.mulf %10, %9 : vector<8x128xf32>
    %c0_6 = arith.constant 0 : index
    %c0_7 = arith.constant 0 : index
    %c0_8 = arith.constant 0 : index
    %c0_9 = arith.constant 0 : index
    %12 = vector.load %arg5[%c0_6, %c0_7, %c0_8, %c0_9] : memref<1x1x8x128xf32, #tpu.memory_space<vmem>>, vector<1x1x8x128xf32>
    %13 = vector.shape_cast %12 : vector<1x1x8x128xf32> to vector<8x128xf32>
    %14 = vector.shape_cast %11 : vector<8x128xf32> to vector<1x8x128xf32>
    %cst_10 = arith.constant dense<0.000000e+00> : vector<8x128xf32>
    %15 = vector.multi_reduction <add>, %14, %cst_10 [0] : vector<1x8x128xf32> to vector<8x128xf32>
    %16 = arith.addf %13, %15 : vector<8x128xf32>
    %c0_11 = arith.constant 0 : index
    %c0_12 = arith.constant 0 : index
    %c0_13 = arith.constant 0 : index
    %c0_14 = arith.constant 0 : index
    %17 = vector.load %arg5[%c0_11, %c0_12, %c0_13, %c0_14] : memref<1x1x8x128xf32, #tpu.memory_space<vmem>>, vector<1x1x8x128xf32>
    %18 = vector.shape_cast %17 : vector<1x1x8x128xf32> to vector<8x128xf32>
    %19 = vector.shape_cast %16 : vector<8x128xf32> to vector<1x1x8x128xf32>
    tpu.vector_store %arg5[%c0_11, %c0_12, %c0_13, %c0_14], %19 {strides = array<i32>} : memref<1x1x8x128xf32, #tpu.memory_space<vmem>>, vector<1x1x8x128xf32>,
    %c0_15 = arith.constant 0 : index
    %c0_16 = arith.constant 0 : index
    %c0_17 = arith.constant 0 : index
    %c0_18 = arith.constant 0 : index
    %20 = vector.load %arg6[%c0_15, %c0_16, %c0_17, %c0_18] : memref<1x1x8x128xf32, #tpu.memory_space<vmem>>, vector<1x1x8x128xf32>
    %21 = vector.shape_cast %20 : vector<1x1x8x128xf32> to vector<8x128xf32>
    %22 = vector.shape_cast %4 : vector<8x128xf32> to vector<1x8x128xf32>
    %cst_19 = arith.constant dense<0.000000e+00> : vector<8x128xf32>
    %23 = vector.multi_reduction <add>, %22, %cst_19 [0] : vector<1x8x128xf32> to vector<8x128xf32>
    %24 = arith.addf %21, %23 : vector<8x128xf32>
    %c0_20 = arith.constant 0 : index
    %c0_21 = arith.constant 0 : index
    %c0_22 = arith.constant 0 : index
    %c0_23 = arith.constant 0 : index
    %25 = vector.load %arg6[%c0_20, %c0_21, %c0_22, %c0_23] : memref<1x1x8x128xf32, #tpu.memory_space<vmem>>, vector<1x1x8x128xf32>
    %26 = vector.shape_cast %25 : vector<1x1x8x128xf32> to vector<8x128xf32>
    %27 = vector.shape_cast %24 : vector<8x128xf32> to vector<1x1x8x128xf32>
    tpu.vector_store %arg6[%c0_20, %c0_21, %c0_22, %c0_23], %27 {strides = array<i32>} : memref<1x1x8x128xf32, #tpu.memory_space<vmem>>, vector<1x1x8x128xf32>,
    return
  }
  func.func @transform_0(%arg0: i32, %arg1: i32, %arg2: i32) -> (i32, i32, i32) {
    %c1_i32 = arith.constant 1 : i32
    %0 = arith.muli %arg1, %c1_i32 : i32
    %1 = arith.addi %0, %arg2 : i32
    %c0_i32 = arith.constant 0 : i32
    %c0_i32_0 = arith.constant 0 : i32
    return %arg0, %1, %c0_i32 : i32, i32, i32
  }
  func.func @transform_1(%arg0: i32, %arg1: i32, %arg2: i32) -> (i32, i32, i32) {
    %c1_i32 = arith.constant 1 : i32
    %0 = arith.muli %arg1, %c1_i32 : i32
    %1 = arith.addi %0, %arg2 : i32
    %c0_i32 = arith.constant 0 : i32
    %c0_i32_0 = arith.constant 0 : i32
    return %arg0, %1, %c0_i32 : i32, i32, i32
  }
  func.func @transform_2(%arg0: i32, %arg1: i32, %arg2: i32) -> (i32, i32, i32, i32) {
    %c0_i32 = arith.constant 0 : i32
    %c0_i32_0 = arith.constant 0 : i32
    %c0_i32_1 = arith.constant 0 : i32
    return %arg0, %arg1, %c0_i32, %c0_i32_0 : i32, i32, i32, i32
  }
  func.func @transform_3(%arg0: i32, %arg1: i32, %arg2: i32) -> (i32, i32, i32, i32) {
    %c0_i32 = arith.constant 0 : i32
    %c0_i32_0 = arith.constant 0 : i32
    %c0_i32_1 = arith.constant 0 : i32
    return %arg0, %arg1, %c0_i32, %c0_i32_0 : i32, i32, i32, i32
  }
}

</mosaic_0001>

<bundles_post_ra>
// kernel: tpu_custom_call.1
= control target key start
LH: loop header
LB: loop body
LE: loop exit
PB: predicated region body
PF: predicated region fallthrough
CT: control target
= control target key end

     0   :  { %9 = vsyncpa [#allocation3], 0  ;;  %s953_s0 = inlined_call_operand.hbm [shape: f32[2,8,128], index: 0, kind: input, shape index: {}]   ;;  %s954_s1 = inlined_call_operand.hbm [shape: f32[2,8,128], index: 1, kind: input, shape index: {}]   ;;  %s955_s2 = inlined_call_operand.hbm [shape: f32[2,1,8,128], index: 2, kind: output, shape index: {0}]   ;;  %s956_s3 = inlined_call_operand.hbm [shape: f32[2,1,8,128], index: 3, kind: output, shape index: {1}]  }
   0x1   :  { %11 = vsyncpa [#allocation3 + $0x1], 0 }
   0x2   :  { %12 = vsyncpa [#allocation6], 0 }
   0x3   :  { %14 = vsyncpa [#allocation6 + $0x1], 0 }
   0x4   :  { %15 = vsyncpa [#allocation4], 0 }
   0x5   :  { %17 = vsyncpa [#allocation4 + $0x1], 0 }
   0x6   :  { %18 = vsyncpa [#allocation9], 0 }
   0x7   :  { %20 = vsyncpa [#allocation9 + $0x1], 0  ;;  %s758_s12 = smov 0   ;;  %s760_s13 = smov 0  }
   0x8   :  { %s762_s14 = smov 0   ;;  %s764_s15 = smov 0  }
   0x9   :  { %s766_s16 = smov 0   ;;  %s768_s17 = smov 0  }
   0xa LB: > { %s468_s18 = sadd.s32 4294967295, %s732_s17   ;;  %s469_s19 = sadd.s32 4294967294, %s732_s17   ;;  %s732_s17 = sphi %s768_s17, %s26_s17   ;;  %s728_s16 = sphi %s766_s16, %s968_s16   ;;  %s724_s15 = sphi %s764_s15, %s967_s15   ;;  %s720_s14 = sphi %s762_s14, %s966_s14   ;;  %s716_s13 = sphi %s760_s13, %s965_s13   ;;  %s712_s12 = sphi %s758_s12, %s964_s12  }
   0xb   : > { %s45_s20 = sadd.s32 1, %s728_s16  ;;  %s56_s21 = sadd.s32 1, %s720_s14 }
   0xc   : > { %p47_p0 = scmp.ge.s32.totalorder %s45_s20, 2  ;;  %p63_p1 = scmp.ne.s32.totalorder %s720_s14, %s716_s13 }
   0xd   : > { %p64_p2 = scmp.eq.s32.totalorder %s732_s17, 0  ;;  %p69_p3 = scmp.ne.s32.totalorder %s716_s13, %s712_s12 }
   0xe   : > { %s970_s20 = smov (%p47_p0, %s45_s20), 0  ;;  %p70_p5 = scmp.eq.s32.totalorder %s468_s18, 0 }
   0xf   : > { %p799_p4 = por %p64_p2, %p63_p1  ;;  %s51_s23 = ssub.s32 %s728_s16, %s970_s20 }
  0x10   : > { %p125_p6 = scmp.eq.s32.totalorder %s468_s18, 1  ;;  %p54_p7 = scmp.eq.s32.totalorder %s51_s23, 0 }
  0x11   : > { %p805_p8 = por %p70_p5, %p69_p3  ;;  %p131_p10 = scmp.eq.s32.totalorder %s469_s19, 1 }
  0x12   : > { %p809_p9 = por %p125_p6, %p63_p1  ;;  %p509_p13 = scmp.lt.s32.totalorder %s732_s17, 2 }
  0x13   : > { %s814_s26 = scalar_select %p54_p7, %s720_s14, %s56_s21  }
  0x14   : > { %p816_p11 = por %p131_p10, %p69_p3  ;;  %s823_s28 = sand.u32 1, %s720_s14  }
  0x15   : > { %s472_s29 = sshll.u32 %s823_s28, 3  ;;  %s473_s30 = sshll.u32 %s728_s16, 7 }
  0x16   : > { %s190_s6 = scalar_lea.hbm %s953_s0, %s473_s30  ;;  %s183_s7 = scalar_lea.vmem [#allocation2], %s472_s29 }
  0x17   : > { %s192_s8 = sshll.u32 %s183_s7, 4  ;;  %p832_p0 = pnand %p509_p13, %p799_p4  ;;  %s193_s8 = int_to_ptr.vmem [resolvable:$true] %s192_s8 }
  0x18   : > { %p476_p1 = scmp.ge.s32.totalorder %s732_s17, 1  ;;  %p217_p2 = scmp.lt.s32.totalorder %s732_s17, 3 }
  0x19   : > { %s180_s10 = scalar_lea.sflag [#allocation3], %s823_s28  ;;  %p564_p3 = pneg %p832_p0 }
  0x1a   : > { %s575_s11 = scalar_lea.vmem %s193_s8, 128  ;;  %s734_s18 = smov [#allocation2]  }
  0x1b   : > { %p576_p5 = scmp.ne.s32.totalorder %s193_s8, %s575_s11  ;;  %s580_s19 = sshll.u32 %s734_s18, 4  ;;  %s581_s19 = int_to_ptr.vmem [resolvable:$false] %s580_s19 }
  0x1c   : > { %s582_s21 = scalar_lea.vmem %s581_s19, 256  ;;  %p583_p4 = scmp.lt.s32.totalorder %s193_s8, %s581_s19 }
  0x1d   : > { %p578_p6 = pnand %p576_p5, %p564_p3  ;;  %p584_p10 = scmp.lt.s32.totalorder %s582_s21, %s575_s11 }
  0x1f   : > { %p579_p7 = pneg %p578_p6  ;;  %p585_p13 = por %p584_p10, %p583_p4 }
  0x21   : > { %p586_p12 = pnand %p585_p13, %p579_p7 }
  0x23   : > { %589 = shalt.err (!%p586_p12)
}
  0x24   : > { %498 = dma.hbm_to_vmem [thread:$0]  (!%p832_p0), %s190_s6, 128, %s193_s8, %s180_s10  }
  0x25   : > { %p850_p5 = pnand %p476_p1, %p217_p2  ;;  %s210_s5 = scalar_lea.hbm %s954_s1, %s473_s30 }
  0x26   : > { %s203_s7 = scalar_lea.vmem [#allocation5], %s472_s29  ;;  %s200_s18 = scalar_lea.sflag [#allocation6], %s823_s28 }
  0x27   : > { %s212_s11 = sshll.u32 %s203_s7, 4  ;;  %s735_s6 = smov [#allocation5]   ;;  %s213_s11 = int_to_ptr.vmem [resolvable:$true] %s212_s11 }
  0x28   : > { %s603_s19 = scalar_lea.vmem %s213_s11, 128  ;;  %s608_s8 = sshll.u32 %s735_s6, 4  ;;  %s609_s8 = int_to_ptr.vmem [resolvable:$false] %s608_s8 }
  0x29   : > { %p604_p12 = scmp.ne.s32.totalorder %s213_s11, %s603_s19  ;;  %s610_s10 = scalar_lea.vmem %s609_s8, 256 }
  0x2a   : > { %p611_p1 = scmp.lt.s32.totalorder %s213_s11, %s609_s8  ;;  %p612_p2 = scmp.lt.s32.totalorder %s610_s10, %s603_s19 }
  0x2b   : > { %p606_p6 = pnand %p604_p12, %p564_p3 }
  0x2c   : > { %p613_p4 = por %p612_p2, %p611_p1 }
  0x2d   : > { %p607_p7 = pneg %p606_p6 }
  0x2f   : > { %p614_p10 = pnand %p613_p4, %p607_p7 }
  0x31   : > { %617 = shalt.err (!%p614_p10)
}
  0x32   : > { %501 = dma.hbm_to_vmem [thread:$0]  (!%p832_p0), %s210_s5, 128, %s213_s11, %s200_s18  }
  0x33   : > { %221 = sbr.rel (%p850_p5) target bundleno = 111 (0x6f), region = 28  ;;  %s866_s28 = sand.u32 (!%p850_p5), 1, %s716_s13  }
  0x34   : > { %s869_s29 = sshll.u32 (!%p850_p5), %s866_s28, 3  ;;  %s224_s30 = scalar_lea.sflag (!%p850_p5), [#allocation3], %s866_s28 }
  0x35   : > { %s227_s21 = scalar_lea.vmem (!%p850_p5), [#allocation2], %s869_s29 }
  0x38   : > { %695 = dma.done.wait (%p805_p8), %s224_s30, 128  }
  0x39   : > { %697 = vsyncadd (%p805_p8), %s224_s30, 4294967168  ;;  %s233_s9 = scalar_lea.sflag [#allocation6], %s866_s28  ;;  %s236_s22 = scalar_lea.vmem [#allocation5], %s869_s29 }
  0x3a   : > { %699 = dma.done.wait (%p805_p8), %s233_s9, 128  }
  0x3b   : > { %701 = vsyncadd (%p805_p8), %s233_s9, 4294967168  ;;  %s483_s23 = sshll.u32 %s724_s15, 7  ;;  %s268_s4 = scalar_lea.vmem [#allocation8], %s869_s29  ;;  %v277_v0 = vld [vmem:[%s227_s21] sm:$0xff] }
  0x3c   : > { %s326_s5 = sshll.u32 %s268_s4, 4  ;;  %v279_v1 = vsub.f32 0.0, %v277_v0  ;;  %s890_s18 = scalar_lea.hbm %s956_s3, %s483_s23  ;;  %291 = vst [vmem:[%s268_s4] sm:$0xff] %v277_v0  ;;  %s327_s5 = int_to_ptr.vmem [resolvable:$true] %s326_s5 }
  0x3d   : > { %s298_s24 = scalar_lea.sflag [#allocation9], %s866_s28  ;;  %s618_s19 = scalar_lea.vmem %s327_s5, 128 }
  0x3e   : > { %v280_v2 = vmul.f32 1.442695, %v279_v1  ;;  %p619_p8 = scmp.ne.s32.totalorder %s327_s5, %s618_s19  ;;  %s736_s6 = smov [#allocation8]  }
  0x3f   : > { %s622_s8 = sshll.u32 %s736_s6, 4  ;;  %s623_s8 = int_to_ptr.vmem [resolvable:$false] %s622_s8 }
  0x40   : > { %p620_p0 = pnand %p619_p8, %p809_p9  ;;  %s624_s10 = scalar_lea.vmem %s623_s8, 256 }
  0x41   : > { %p625_p13 = scmp.lt.s32.totalorder %s327_s5, %s623_s8  ;;  %p626_p5 = scmp.lt.s32.totalorder %s624_s10, %s618_s19 }
  0x42   : > { %p621_p3 = pneg %p620_p0 }
  0x43   : > { %p627_p12 = por %p626_p5, %p625_p13 }
  0x45   : > { %p628_p6 = pnand %p627_p12, %p621_p3 }
  0x47   : > { %631 = shalt.err (!%p628_p6)
}
  0x48   : > { %s632_s30 = scalar_lea.hbm %s890_s18, 128  ;;  %s636_s4 = scalar_lea.hbm %s956_s3, 256 }
  0x49   : > { %p633_p7 = scmp.ne.s32.totalorder %s890_s18, %s632_s30  ;;  %p637_p4 = scmp.lt.s32.totalorder %s890_s18, %s956_s3 }
  0x4a   : > { %p638_p10 = scmp.lt.s32.totalorder %s636_s4, %s632_s30 }
  0x4b   : > { %p634_p1 = pnand %p633_p7, %p809_p9 }
  0x4c   : > { %p639_p8 = por %p638_p10, %p637_p4 }
  0x4d   : > { %p635_p2 = pneg %p634_p1 }
  0x4f   : > { %p640_p0 = pnand %p639_p8, %p635_p2 }
  0x51   : > { %643 = shalt.err (!%p640_p0)
}
  0x52   : > { %492 = dma.vmem_to_hbm [thread:$0]  (%p809_p9), %s327_s5, 128, %s890_s18, %s298_s24   ;;  %560 = vpow2.f32 %v280_v2  ;;  %v278_v3 = vld [vmem:[%s236_s22] sm:$0xff] }
  0x53   : > { %v282_v4 = vmul.f32 %v278_v3, %v278_v3  ;;  %s261_s19 = scalar_lea.vmem [#allocation7], %s869_s29  ;;  %s310_s30 = scalar_lea.hbm %s955_s2, %s483_s23 }
  0x54   : > { %s312_s6 = sshll.u32 %s261_s19, 4  ;;  %s293_s21 = scalar_lea.sflag [#allocation4], %s866_s28  ;;  %s313_s6 = int_to_ptr.vmem [resolvable:$true] %s312_s6 }
  0x55   : > { %s644_s9 = scalar_lea.vmem %s313_s6, 128  ;;  %s737_s5 = smov [#allocation7]  }
  0x56   : > { %p645_p3 = scmp.ne.s32.totalorder %s313_s6, %s644_s9  ;;  %s648_s22 = sshll.u32 %s737_s5, 4  ;;  %s649_s22 = int_to_ptr.vmem [resolvable:$false] %s648_s22 }
  0x57   : > { %s650_s18 = scalar_lea.vmem %s649_s22, 256  ;;  %p651_p12 = scmp.lt.s32.totalorder %s313_s6, %s649_s22 }
  0x58   : > { %p646_p13 = pnand %p645_p3, %p809_p9  ;;  %p652_p6 = scmp.lt.s32.totalorder %s650_s18, %s644_s9 }
  0x5a   : > { %p647_p5 = pneg %p646_p13  ;;  %p653_p7 = por %p652_p6, %p651_p12 }
  0x5c   : > { %p654_p1 = pnand %p653_p7, %p647_p5 }
  0x5f   : > { %v561_v5 = vpop.eup %560 }
  0x60   : > { %v283_v6 = vmul.f32 %v561_v5, %v282_v4 }
  0x62   : > { %287 = vst [vmem:[%s261_s19] sm:$0xff] %v283_v6 }
  0x63   : > { %657 = shalt.err (!%p654_p1)
}
  0x64   : > { %s658_s15 = scalar_lea.hbm %s310_s30, 128  ;;  %s662_s23 = scalar_lea.hbm %s955_s2, 256 }
  0x65   : > { %p659_p2 = scmp.ne.s32.totalorder %s310_s30, %s658_s15  ;;  %p663_p8 = scmp.lt.s32.totalorder %s310_s30, %s955_s2 }
  0x66   : > { %p664_p0 = scmp.lt.s32.totalorder %s662_s23, %s658_s15 }
  0x67   : > { %p660_p4 = pnand %p659_p2, %p809_p9 }
  0x68   : > { %p665_p3 = por %p664_p0, %p663_p8 }
  0x69   : > { %p661_p10 = pneg %p660_p4 }
  0x6b   : > { %p666_p13 = pnand %p665_p3, %p661_p10 }
  0x6d   : > { %669 = shalt.err (!%p666_p13)
}
  0x6e   : > { %491 = dma.vmem_to_hbm [thread:$0]  (%p809_p9), %s313_s6, 128, %s310_s30, %s293_s21  }
  0x6f PF: > { %s338_s7 = sand.u32 1, %s712_s12   ;;  %p963_p5 = scmp.ge.s32.totalorder %s732_s17, 2 }
  0x70   : > { %s339_s11 = scalar_lea.sflag [#allocation4], %s338_s7 }
  0x71   : > { %p503_p12 = pnand %p963_p5, %p816_p11 }
  0x73   : > { %p504_p6 = pneg %p503_p12 }
  0x75   : > { %703 = dma.done.wait (%p504_p6), %s339_s11, 128  }
  0x76   : > { %705 = vsyncadd (%p504_p6), %s339_s11, 4294967168  ;;  %s348_s19 = scalar_lea.sflag [#allocation9], %s338_s7 }
  0x77   : > { %707 = dma.done.wait (%p504_p6), %s348_s19, 128  }
  0x78   : > { %709 = vsyncadd (%p504_p6), %s348_s19, 4294967168  ;;  %s26_s17 = sadd.s32 1, %s732_s17   ;;  %s964_s12 = smov %s716_s13 }
  0x79   : > { %p23_p7 = scmp.ge.s32.totalorder %s26_s17, 4   ;;  %s965_s13 = smov %s720_s14 }
  0x7a   : > { %s966_s14 = smov %s814_s26  ;;  %s967_s15 = smov %s728_s16 }
  0x7b   : > { %s968_s16 = smov %s970_s20  ;;  %25 = sbr.rel (!%p23_p7) target bundleno = 10 (0xa), region = 107 }
  0x80   :  { %353 = vsyncpa [#allocation3], 1 }
  0x81   :  { %355 = vsyncpa [#allocation3 + $0x1], 1 }
  0x82   :  { %356 = vsyncpa [#allocation6], 1 }
  0x83   :  { %358 = vsyncpa [#allocation6 + $0x1], 1 }
  0x84   :  { %359 = vsyncpa [#allocation4], 1 }
  0x85   :  { %361 = vsyncpa [#allocation4 + $0x1], 1 }
  0x86   :  { %362 = vsyncpa [#allocation9], 1 }
  0x87   :  { %364 = vsyncpa [#allocation9 + $0x1], 1 }

</bundles_post_ra>
